<compile_context>
chip_gen: v7x
topology: tpu7x:2x2x1
jax: 0.10.0
libtpu: 0.0.40
codegen_flags: <defaults>
</compile_context>

<pallas_src>
import jax
import jax.numpy as jnp
from jax.experimental import pallas as pl
from jax.experimental.pallas import tpu as pltpu

LANE = 128
SUBLANE = 8


def _round_up(x, m):
    return ((x + m - 1) // m) * m


# --------------------------------------------------------------------------- #
# Kernel: one grid step == one timestep of the recurrence.
# --------------------------------------------------------------------------- #
def rnn_rollout_kernel(
    obs_ref,    # [Bp, Dp]     bf16, current timestep (leading T squeezed)
    hin_ref,    # [Bp, Hp]     f32, initial hidden state (read at t==0)
    w1_ref,     # [Dp, Hp]     bf16
    b1_ref,     # [1, Hp]      f32
    wih_ref,    # [Hp, 3*Hp]   bf16, gates packed (r | z | n)
    whh_ref,    # [Hp, 3*Hp]   bf16
    bg_ref,     # [1, 3*Hp]    f32, (bir+bhr | biz+bhz | bin)
    bhn_ref,    # [1, Hp]      f32
    w2_ref,     # [Hp, LANE]   bf16, real fc2 weight in column 0
    b2_ref,     # [1, LANE]    f32
    q_ref,      # [Bp, LANE]   f32, current timestep output
    hout_ref,   # [Bp, Hp]     f32, final hidden state (written at t==T-1)
    h_scratch,  # [Bp, Hp]     f32 VMEM scratch, carried hidden state
):
    t = pl.program_id(0)
    hp = hout_ref.shape[1]

    @pl.when(t == 0)
    def _():
        h_scratch[...] = hin_ref[...]

    h = h_scratch[...]

    # fc1 + ReLU
    x = jnp.dot(obs_ref[...], w1_ref[...],
                preferred_element_type=jnp.float32) + b1_ref[...]
    x = jnp.maximum(x, 0.0)

    # GRUCell (PyTorch semantics), six gate matmuls fused into two.
    #   r = sigmoid(x@Wir + bir + h@Whr + bhr)
    #   z = sigmoid(x@Wiz + biz + h@Whz + bhz)
    #   n = tanh(x@Win + bin + r * (h@Whn + bhn))
    #   h' = (1 - z) * n + z * h
    gi = jnp.dot(x.astype(jnp.bfloat16), wih_ref[...],
                 preferred_element_type=jnp.float32) + bg_ref[...]
    gh = jnp.dot(h.astype(jnp.bfloat16), whh_ref[...],
                 preferred_element_type=jnp.float32)

    r = jax.nn.sigmoid(gi[:, 0:hp] + gh[:, 0:hp])
    z = jax.nn.sigmoid(gi[:, hp:2 * hp] + gh[:, hp:2 * hp])
    n = jnp.tanh(gi[:, 2 * hp:3 * hp] + r * (gh[:, 2 * hp:3 * hp] + bhn_ref[...]))
    h_new = (1.0 - z) * n + z * h

    # fc2 — padded to 128 lanes so the store is lane-dense; q is column 0.
    q = jnp.dot(h_new.astype(jnp.bfloat16), w2_ref[...],
                preferred_element_type=jnp.float32) + b2_ref[...]

    q_ref[...] = q
    h_scratch[...] = h_new

    @pl.when(t == pl.num_programs(0) - 1)
    def _():
        hout_ref[...] = h_new


# --------------------------------------------------------------------------- #
# Host-side packing: fuse gate weights/biases, pad to 128 lanes, cast to bf16.
# --------------------------------------------------------------------------- #
def pack_params(params, input_shape, hidden):
    dp = _round_up(input_shape, LANE)
    hp = _round_up(hidden, LANE)

    def pad2(a, rows, cols):
        return jnp.pad(a, ((0, rows - a.shape[0]), (0, cols - a.shape[1])))

    w1 = pad2(params["w1"], dp, hp).astype(jnp.bfloat16)
    b1 = pad2(params["b1"], 1, hp)

    wih = jnp.zeros((hp, 3 * hp), jnp.float32)
    whh = jnp.zeros((hp, 3 * hp), jnp.float32)
    for g, (wi, wh) in enumerate((("wir", "whr"), ("wiz", "whz"), ("win", "whn"))):
        wih = wih.at[:hidden, g * hp:g * hp + hidden].set(params[wi])
        whh = whh.at[:hidden, g * hp:g * hp + hidden].set(params[wh])
    wih = wih.astype(jnp.bfloat16)
    whh = whh.astype(jnp.bfloat16)

    bg = jnp.zeros((1, 3 * hp), jnp.float32)
    bg = bg.at[:, 0 * hp:0 * hp + hidden].set(params["bir"] + params["bhr"])
    bg = bg.at[:, 1 * hp:1 * hp + hidden].set(params["biz"] + params["bhz"])
    bg = bg.at[:, 2 * hp:2 * hp + hidden].set(params["bin"])

    bhn = pad2(params["bhn"], 1, hp)

    w2 = (jnp.zeros((hp, LANE), jnp.float32)
          .at[:hidden, 0:1].set(params["w2"])).astype(jnp.bfloat16)
    b2 = jnp.zeros((1, LANE), jnp.float32).at[:, 0:1].set(params["b2"])

    return {"w1": w1, "b1": b1, "wih": wih, "whh": whh,
            "bg": bg, "bhn": bhn, "w2": w2, "b2": b2}


# --------------------------------------------------------------------------- #
# Wrappers
# --------------------------------------------------------------------------- #
@jax.jit
def rnn_rollout(obs_seq, hidden_state, packed):
    """Run the cell over a whole rollout in one pallas_call.

    obs_seq: [T, B, D]; hidden_state reshapable to [B, H].
    Returns (q_seq [T, B, 1], h_final [B, H]).
    """
    T, B, D = obs_seq.shape
    H = hidden_state.shape[-1]
    h_in = hidden_state.reshape(-1, H)
    assert h_in.shape[0] == B, "hidden_state must flatten to the same batch as obs"

    dp, hp = packed["w1"].shape
    bp = _round_up(B, SUBLANE)

    # Pad ONCE per rollout (not per step).
    obs_p = jnp.zeros((T, bp, dp), jnp.bfloat16).at[:, :B, :D].set(
        obs_seq.astype(jnp.bfloat16))
    h_p = jnp.zeros((bp, hp), jnp.float32).at[:B, :H].set(h_in.astype(jnp.float32))

    def const2(shape):
        return pl.BlockSpec(shape, lambda t: (0, 0))

    grid_spec = pltpu.PrefetchScalarGridSpec(
        num_scalar_prefetch=0,
        grid=(T,),
        in_specs=[
            pl.BlockSpec((None, bp, dp), lambda t: (t, 0, 0)),   # obs streamed over T
            const2((bp, hp)),                                    # initial h (once)
            const2((dp, hp)), const2((1, hp)),                   # fc1 (resident)
            const2((hp, 3 * hp)), const2((hp, 3 * hp)),          # GRU weights (resident)
            const2((1, 3 * hp)), const2((1, hp)),                # GRU biases
            const2((hp, LANE)), const2((1, LANE)),               # fc2
        ],
        out_specs=(
            pl.BlockSpec((None, bp, LANE), lambda t: (t, 0, 0)), # q per step
            const2((bp, hp)),                                    # final hidden
        ),
        scratch_shapes=[pltpu.VMEM((bp, hp), jnp.float32)],      # carried hidden
    )

    flops = int(2 * T * bp * (dp * hp + 6 * hp * hp + hp * LANE))
    bytes_weights = int(2 * (dp * hp + 2 * hp * 3 * hp + hp * LANE)
                        + 4 * (hp + 3 * hp + hp + LANE))
    bytes_io = int(T * (bp * dp * 2 + bp * LANE * 4) + 2 * bp * hp * 4)

    q_p, h_out = pl.pallas_call(
        rnn_rollout_kernel,
        grid_spec=grid_spec,
        out_shape=(
            jax.ShapeDtypeStruct((T, bp, LANE), jnp.float32),
            jax.ShapeDtypeStruct((bp, hp), jnp.float32),
        ),
        input_output_aliases={1: 1},   # hidden-state buffer updated in place
        compiler_params=pltpu.CompilerParams(
            dimension_semantics=("arbitrary",)),
        cost_estimate=pl.CostEstimate(
            flops=flops,
            transcendentals=int(3 * T * bp * hp),
            bytes_accessed=bytes_weights + bytes_io),
    )(obs_p, h_p,
      packed["w1"], packed["b1"], packed["wih"], packed["whh"],
      packed["bg"], packed["bhn"], packed["w2"], packed["b2"])

    return q_p[:, :B, :1], h_out[:B, :H]


def rnn_forward(obs, hidden_state, packed):
    """Single step, matching RNN.forward(obs, hidden_state) -> (q, h)."""
    q_seq, h = rnn_rollout(obs[None], hidden_state, packed)
    return q_seq[0], h


# --------------------------------------------------------------------------- #
# Reference + synthetic params
# --------------------------------------------------------------------------- #
def rnn_reference_step(obs, h, params):
    x = jnp.maximum(obs @ params["w1"] + params["b1"], 0.0)
    r = jax.nn.sigmoid(x @ params["wir"] + params["bir"] + h @ params["whr"] + params["bhr"])
    z = jax.nn.sigmoid(x @ params["wiz"] + params["biz"] + h @ params["whz"] + params["bhz"])
    n = jnp.tanh(x @ params["win"] + params["bin"] + r * (h @ params["whn"] + params["bhn"]))
    h_new = (1.0 - z) * n + z * h
    q = h_new @ params["w2"] + params["b2"]
    return q, h_new


def init_params(key, input_shape, hidden):
    """Deterministic synthetic parameters (shapes match the PyTorch module)."""
    ks = jax.random.split(key, 16)
    u = lambda k, shape, s: jax.random.uniform(k, shape, jnp.float32, -s, s)
    s1 = 1.0 / jnp.sqrt(input_shape)
    sh = 1.0 / jnp.sqrt(hidden)
    return {
        "w1": u(ks[0], (input_shape, hidden), s1),
        "b1": u(ks[1], (1, hidden), s1),
        "wir": u(ks[2], (hidden, hidden), sh),
        "wiz": u(ks[3], (hidden, hidden), sh),
        "win": u(ks[4], (hidden, hidden), sh),
        "whr": u(ks[5], (hidden, hidden), sh),
        "whz": u(ks[6], (hidden, hidden), sh),
        "whn": u(ks[7], (hidden, hidden), sh),
        "bir": u(ks[8], (1, hidden), sh),
        "biz": u(ks[9], (1, hidden), sh),
        "bin": u(ks[10], (1, hidden), sh),
        "bhr": u(ks[11], (1, hidden), sh),
        "bhz": u(ks[12], (1, hidden), sh),
        "bhn": u(ks[13], (1, hidden), sh),
        "w2": u(ks[14], (hidden, 1), sh),
        "b2": u(ks[15], (1, 1), sh),
    }


if __name__ == "__main__":
    B = 8             # batch (agents * episodes flattened)
    INPUT_SHAPE = 32  # obs feature dim
    HIDDEN = 32       # rnn_hidden_dim
    T = 12            # rollout length

    key = jax.random.PRNGKey(0)
    k_obs, k_h, k_p = jax.random.split(key, 3)

    obs_seq = jax.random.normal(k_obs, (T, B, INPUT_SHAPE), jnp.float32)
    hidden0 = jax.random.normal(k_h, (B, HIDDEN), jnp.float32)
    params = init_params(k_p, INPUT_SHAPE, HIDDEN)
    packed = pack_params(params, INPUT_SHAPE, HIDDEN)

    # --- single-step forward (matches the PyTorch module's forward signature) ---
    q1, h1 = rnn_forward(obs_seq[0], hidden0, packed)
    jax.block_until_ready((q1, h1))
    q1_ref, h1_ref = rnn_reference_step(obs_seq[0], hidden0, params)
    assert q1.shape == (B, 1) and h1.shape == (B, HIDDEN)
    assert jnp.allclose(q1, q1_ref, rtol=2e-2, atol=2e-2)
    assert jnp.allclose(h1, h1_ref, rtol=2e-2, atol=2e-2)

    # --- full rollout: one pallas_call, time loop internal, weights resident ---
    q_seq, h_final = rnn_rollout(obs_seq, hidden0, packed)
    jax.block_until_ready((q_seq, h_final))

    h_ref = hidden0
    q_refs = []
    for t in range(T):
        q_t, h_ref = rnn_reference_step(obs_seq[t], h_ref, params)
        q_refs.append(q_t)
    q_ref_seq = jnp.stack(q_refs, axis=0)

    assert q_seq.shape == (T, B, 1) and h_final.shape == (B, HIDDEN)
    # bf16 weights/activations compound slightly over T steps -> looser tolerance.
    assert jnp.allclose(q_seq, q_ref_seq, rtol=5e-2, atol=5e-2)
    assert jnp.allclose(h_final, h_ref, rtol=5e-2, atol=5e-2)

    print("KERNEL_OK")
</pallas_src>

<mosaic_0001>
module attributes {stable_mosaic.version = 11 : i64} {
  func.func @rnn_rollout_kernel(%arg0: i32, %arg1: memref<1x8x128xbf16, #tpu.memory_space<vmem>>, %arg2: memref<8x128xf32, #tpu.memory_space<vmem>>, %arg3: memref<128x128xbf16, #tpu.memory_space<vmem>>, %arg4: memref<1x128xf32, #tpu.memory_space<vmem>>, %arg5: memref<128x384xbf16, #tpu.memory_space<vmem>>, %arg6: memref<128x384xbf16, #tpu.memory_space<vmem>>, %arg7: memref<1x384xf32, #tpu.memory_space<vmem>>, %arg8: memref<1x128xf32, #tpu.memory_space<vmem>>, %arg9: memref<128x128xbf16, #tpu.memory_space<vmem>>, %arg10: memref<1x128xf32, #tpu.memory_space<vmem>>, %arg11: memref<1x8x128xf32, #tpu.memory_space<vmem>>, %arg12: memref<8x128xf32, #tpu.memory_space<vmem>>, %arg13: memref<8x128xf32, #tpu.memory_space<vmem>>) attributes {dimension_semantics = [#tpu.dimension_semantics<arbitrary>], iteration_bounds = array<i64: 1>, scalar_prefetch = 0 : i64, scratch_operands = 1 : i64, tpu.core_type = #tpu.core_type<tc>, window_params = [{transform_indices = @transform_0, window_bounds = array<i64: 1, 8, 128>}, {pipeline_mode = #tpu.pipeline_mode<synchronous>, transform_indices = @transform_1, window_bounds = array<i64: 8, 128>}, {pipeline_mode = #tpu.pipeline_mode<synchronous>, transform_indices = @transform_2, window_bounds = array<i64: 128, 128>}, {pipeline_mode = #tpu.pipeline_mode<synchronous>, transform_indices = @transform_3, window_bounds = array<i64: 1, 128>}, {pipeline_mode = #tpu.pipeline_mode<synchronous>, transform_indices = @transform_4, window_bounds = array<i64: 128, 384>}, {pipeline_mode = #tpu.pipeline_mode<synchronous>, transform_indices = @transform_5, window_bounds = array<i64: 128, 384>}, {pipeline_mode = #tpu.pipeline_mode<synchronous>, transform_indices = @transform_6, window_bounds = array<i64: 1, 384>}, {pipeline_mode = #tpu.pipeline_mode<synchronous>, transform_indices = @transform_7, window_bounds = array<i64: 1, 128>}, {pipeline_mode = #tpu.pipeline_mode<synchronous>, transform_indices = @transform_8, window_bounds = array<i64: 128, 128>}, {pipeline_mode = #tpu.pipeline_mode<synchronous>, transform_indices = @transform_9, window_bounds = array<i64: 1, 128>}, {transform_indices = @transform_10, window_bounds = array<i64: 1, 8, 128>}, {pipeline_mode = #tpu.pipeline_mode<synchronous>, transform_indices = @transform_11, window_bounds = array<i64: 8, 128>}]} {
    %c0_i32 = arith.constant 0 : i32
    %0 = arith.cmpi eq, %arg0, %c0_i32 : i32
    %1 = arith.extui %0 : i1 to i32
    %c0_i32_0 = arith.constant 0 : i32
    %2 = arith.cmpi ne, %1, %c0_i32_0 : i32
    scf.if %2 {
      %c0_35 = arith.constant 0 : index
      %c0_36 = arith.constant 0 : index
      %64 = vector.load %arg2[%c0_35, %c0_36] : memref<8x128xf32, #tpu.memory_space<vmem>>, vector<8x128xf32>
      %c0_37 = arith.constant 0 : index
      %c0_38 = arith.constant 0 : index
      %65 = vector.load %arg13[%c0_37, %c0_38] : memref<8x128xf32, #tpu.memory_space<vmem>>, vector<8x128xf32>
      tpu.vector_store %arg13[%c0_37, %c0_38], %64 {strides = array<i32>} : memref<8x128xf32, #tpu.memory_space<vmem>>, vector<8x128xf32>,
    } else {
    }
    %c0 = arith.constant 0 : index
    %c0_1 = arith.constant 0 : index
    %3 = vector.load %arg13[%c0, %c0_1] : memref<8x128xf32, #tpu.memory_space<vmem>>, vector<8x128xf32>
    %c0_2 = arith.constant 0 : index
    %c0_3 = arith.constant 0 : index
    %c0_4 = arith.constant 0 : index
    %4 = vector.load %arg1[%c0_2, %c0_3, %c0_4] : memref<1x8x128xbf16, #tpu.memory_space<vmem>>, vector<1x8x128xbf16>
    %5 = vector.shape_cast %4 : vector<1x8x128xbf16> to vector<8x128xbf16>
    %c0_5 = arith.constant 0 : index
    %c0_6 = arith.constant 0 : index
    %6 = vector.load %arg3[%c0_5, %c0_6] : memref<128x128xbf16, #tpu.memory_space<vmem>>, vector<128x128xbf16>
    %cst = arith.constant dense<0.000000e+00> : vector<8x128xf32>
    %7 = tpu.matmul %5, %6, %cst {dimension_numbers = #tpu.dot_dimension_numbers<[1], [0], [0], [1], [0, 0, 1, 1], [], []>} : vector<8x128xbf16>, vector<128x128xbf16>, vector<8x128xf32> -> vector<8x128xf32>
    %c0_7 = arith.constant 0 : index
    %c0_8 = arith.constant 0 : index
    %8 = vector.load %arg4[%c0_7, %c0_8] : memref<1x128xf32, #tpu.memory_space<vmem>>, vector<1x128xf32>
    %9 = vector.broadcast %8 : vector<1x128xf32> to vector<8x128xf32>
    %10 = arith.addf %7, %9 : vector<8x128xf32>
    %cst_9 = arith.constant 0.000000e+00 : f32
    %11 = vector.broadcast %cst_9 : f32 to vector<8x128xf32>
    %12 = arith.maximumf %10, %11 : vector<8x128xf32>
    %13 = arith.truncf %12 : vector<8x128xf32> to vector<8x128xbf16>
    %c0_10 = arith.constant 0 : index
    %c0_11 = arith.constant 0 : index
    %14 = vector.load %arg5[%c0_10, %c0_11] : memref<128x384xbf16, #tpu.memory_space<vmem>>, vector<128x384xbf16>
    %cst_12 = arith.constant dense<0.000000e+00> : vector<8x384xf32>
    %15 = tpu.matmul %13, %14, %cst_12 {dimension_numbers = #tpu.dot_dimension_numbers<[1], [0], [0], [1], [0, 0, 1, 1], [], []>} : vector<8x128xbf16>, vector<128x384xbf16>, vector<8x384xf32> -> vector<8x384xf32>
    %c0_13 = arith.constant 0 : index
    %c0_14 = arith.constant 0 : index
    %16 = vector.load %arg7[%c0_13, %c0_14] : memref<1x384xf32, #tpu.memory_space<vmem>>, vector<1x384xf32>
    %17 = vector.broadcast %16 : vector<1x384xf32> to vector<8x384xf32>
    %18 = arith.addf %15, %17 : vector<8x384xf32>
    %19 = arith.truncf %3 : vector<8x128xf32> to vector<8x128xbf16>
    %c0_15 = arith.constant 0 : index
    %c0_16 = arith.constant 0 : index
    %20 = vector.load %arg6[%c0_15, %c0_16] : memref<128x384xbf16, #tpu.memory_space<vmem>>, vector<128x384xbf16>
    %cst_17 = arith.constant dense<0.000000e+00> : vector<8x384xf32>
    %21 = tpu.matmul %19, %20, %cst_17 {dimension_numbers = #tpu.dot_dimension_numbers<[1], [0], [0], [1], [0, 0, 1, 1], [], []>} : vector<8x128xbf16>, vector<128x384xbf16>, vector<8x384xf32> -> vector<8x384xf32>
    %22 = vector.extract_strided_slice %18 {offsets = [0, 0], sizes = [8, 128], strides = [1, 1]} : vector<8x384xf32> to vector<8x128xf32>
    %23 = vector.extract_strided_slice %21 {offsets = [0, 0], sizes = [8, 128], strides = [1, 1]} : vector<8x384xf32> to vector<8x128xf32>
    %24 = arith.addf %22, %23 : vector<8x128xf32>
    %25 = arith.negf %24 : vector<8x128xf32>
    %26 = math.exp %25 : vector<8x128xf32>
    %cst_18 = arith.constant 1.000000e+00 : f32
    %27 = vector.broadcast %cst_18 : f32 to vector<8x128xf32>
    %28 = arith.addf %27, %26 : vector<8x128xf32>
    %29 = arith.divf %27, %28 : vector<8x128xf32>
    %30 = vector.extract_strided_slice %18 {offsets = [0, 128], sizes = [8, 128], strides = [1, 1]} : vector<8x384xf32> to vector<8x128xf32>
    %31 = vector.extract_strided_slice %21 {offsets = [0, 128], sizes = [8, 128], strides = [1, 1]} : vector<8x384xf32> to vector<8x128xf32>
    %32 = arith.addf %30, %31 : vector<8x128xf32>
    %33 = arith.negf %32 : vector<8x128xf32>
    %34 = math.exp %33 : vector<8x128xf32>
    %cst_19 = arith.constant 1.000000e+00 : f32
    %35 = vector.broadcast %cst_19 : f32 to vector<8x128xf32>
    %36 = arith.addf %35, %34 : vector<8x128xf32>
    %37 = arith.divf %35, %36 : vector<8x128xf32>
    %38 = vector.extract_strided_slice %18 {offsets = [0, 256], sizes = [8, 128], strides = [1, 1]} : vector<8x384xf32> to vector<8x128xf32>
    %39 = vector.extract_strided_slice %21 {offsets = [0, 256], sizes = [8, 128], strides = [1, 1]} : vector<8x384xf32> to vector<8x128xf32>
    %c0_20 = arith.constant 0 : index
    %c0_21 = arith.constant 0 : index
    %40 = vector.load %arg8[%c0_20, %c0_21] : memref<1x128xf32, #tpu.memory_space<vmem>>, vector<1x128xf32>
    %41 = vector.broadcast %40 : vector<1x128xf32> to vector<8x128xf32>
    %42 = arith.addf %39, %41 : vector<8x128xf32>
    %43 = arith.mulf %29, %42 : vector<8x128xf32>
    %44 = arith.addf %38, %43 : vector<8x128xf32>
    %45 = math.tanh %44 : vector<8x128xf32>
    %cst_22 = arith.constant 1.000000e+00 : f32
    %46 = vector.broadcast %cst_22 : f32 to vector<8x128xf32>
    %47 = arith.subf %46, %37 : vector<8x128xf32>
    %48 = arith.mulf %47, %45 : vector<8x128xf32>
    %49 = arith.mulf %37, %3 : vector<8x128xf32>
    %50 = arith.addf %48, %49 : vector<8x128xf32>
    %51 = arith.truncf %50 : vector<8x128xf32> to vector<8x128xbf16>
    %c0_23 = arith.constant 0 : index
    %c0_24 = arith.constant 0 : index
    %52 = vector.load %arg9[%c0_23, %c0_24] : memref<128x128xbf16, #tpu.memory_space<vmem>>, vector<128x128xbf16>
    %cst_25 = arith.constant dense<0.000000e+00> : vector<8x128xf32>
    %53 = tpu.matmul %51, %52, %cst_25 {dimension_numbers = #tpu.dot_dimension_numbers<[1], [0], [0], [1], [0, 0, 1, 1], [], []>} : vector<8x128xbf16>, vector<128x128xbf16>, vector<8x128xf32> -> vector<8x128xf32>
    %c0_26 = arith.constant 0 : index
    %c0_27 = arith.constant 0 : index
    %54 = vector.load %arg10[%c0_26, %c0_27] : memref<1x128xf32, #tpu.memory_space<vmem>>, vector<1x128xf32>
    %55 = vector.broadcast %54 : vector<1x128xf32> to vector<8x128xf32>
    %56 = arith.addf %53, %55 : vector<8x128xf32>
    %c0_28 = arith.constant 0 : index
    %c0_29 = arith.constant 0 : index
    %c0_30 = arith.constant 0 : index
    %57 = vector.load %arg11[%c0_28, %c0_29, %c0_30] : memref<1x8x128xf32, #tpu.memory_space<vmem>>, vector<1x8x128xf32>
    %58 = vector.shape_cast %57 : vector<1x8x128xf32> to vector<8x128xf32>
    %59 = vector.shape_cast %56 : vector<8x128xf32> to vector<1x8x128xf32>
    tpu.vector_store %arg11[%c0_28, %c0_29, %c0_30], %59 {strides = array<i32>} : memref<1x8x128xf32, #tpu.memory_space<vmem>>, vector<1x8x128xf32>,
    %c0_31 = arith.constant 0 : index
    %c0_32 = arith.constant 0 : index
    %60 = vector.load %arg13[%c0_31, %c0_32] : memref<8x128xf32, #tpu.memory_space<vmem>>, vector<8x128xf32>
    tpu.vector_store %arg13[%c0_31, %c0_32], %50 {strides = array<i32>} : memref<8x128xf32, #tpu.memory_space<vmem>>, vector<8x128xf32>,
    %c0_i32_33 = arith.constant 0 : i32
    %61 = arith.cmpi eq, %arg0, %c0_i32_33 : i32
    %62 = arith.extui %61 : i1 to i32
    %c0_i32_34 = arith.constant 0 : i32
    %63 = arith.cmpi ne, %62, %c0_i32_34 : i32
    scf.if %63 {
      %c0_35 = arith.constant 0 : index
      %c0_36 = arith.constant 0 : index
      %64 = vector.load %arg12[%c0_35, %c0_36] : memref<8x128xf32, #tpu.memory_space<vmem>>, vector<8x128xf32>
      tpu.vector_store %arg12[%c0_35, %c0_36], %50 {strides = array<i32>} : memref<8x128xf32, #tpu.memory_space<vmem>>, vector<8x128xf32>,
    } else {
    }
    return
  }
  func.func @transform_0(%arg0: i32) -> (i32, i32, i32) {
    %c0_i32 = arith.constant 0 : i32
    %c0_i32_0 = arith.constant 0 : i32
    %c0_i32_1 = arith.constant 0 : i32
    return %arg0, %c0_i32, %c0_i32_0 : i32, i32, i32
  }
  func.func @transform_1(%arg0: i32) -> (i32, i32) {
    %c0_i32 = arith.constant 0 : i32
    %c0_i32_0 = arith.constant 0 : i32
    %c0_i32_1 = arith.constant 0 : i32
    return %c0_i32, %c0_i32_0 : i32, i32
  }
  func.func @transform_2(%arg0: i32) -> (i32, i32) {
    %c0_i32 = arith.constant 0 : i32
    %c0_i32_0 = arith.constant 0 : i32
    %c0_i32_1 = arith.constant 0 : i32
    return %c0_i32, %c0_i32_0 : i32, i32
  }
  func.func @transform_3(%arg0: i32) -> (i32, i32) {
    %c0_i32 = arith.constant 0 : i32
    %c0_i32_0 = arith.constant 0 : i32
    %c0_i32_1 = arith.constant 0 : i32
    return %c0_i32, %c0_i32_0 : i32, i32
  }
  func.func @transform_4(%arg0: i32) -> (i32, i32) {
    %c0_i32 = arith.constant 0 : i32
    %c0_i32_0 = arith.constant 0 : i32
    %c0_i32_1 = arith.constant 0 : i32
    return %c0_i32, %c0_i32_0 : i32, i32
  }
  func.func @transform_5(%arg0: i32) -> (i32, i32) {
    %c0_i32 = arith.constant 0 : i32
    %c0_i32_0 = arith.constant 0 : i32
    %c0_i32_1 = arith.constant 0 : i32
    return %c0_i32, %c0_i32_0 : i32, i32
  }
  func.func @transform_6(%arg0: i32) -> (i32, i32) {
    %c0_i32 = arith.constant 0 : i32
    %c0_i32_0 = arith.constant 0 : i32
    %c0_i32_1 = arith.constant 0 : i32
    return %c0_i32, %c0_i32_0 : i32, i32
  }
  func.func @transform_7(%arg0: i32) -> (i32, i32) {
    %c0_i32 = arith.constant 0 : i32
    %c0_i32_0 = arith.constant 0 : i32
    %c0_i32_1 = arith.constant 0 : i32
    return %c0_i32, %c0_i32_0 : i32, i32
  }
  func.func @transform_8(%arg0: i32) -> (i32, i32) {
    %c0_i32 = arith.constant 0 : i32
    %c0_i32_0 = arith.constant 0 : i32
    %c0_i32_1 = arith.constant 0 : i32
    return %c0_i32, %c0_i32_0 : i32, i32
  }
  func.func @transform_9(%arg0: i32) -> (i32, i32) {
    %c0_i32 = arith.constant 0 : i32
    %c0_i32_0 = arith.constant 0 : i32
    %c0_i32_1 = arith.constant 0 : i32
    return %c0_i32, %c0_i32_0 : i32, i32
  }
  func.func @transform_10(%arg0: i32) -> (i32, i32, i32) {
    %c0_i32 = arith.constant 0 : i32
    %c0_i32_0 = arith.constant 0 : i32
    %c0_i32_1 = arith.constant 0 : i32
    return %arg0, %c0_i32, %c0_i32_0 : i32, i32, i32
  }
  func.func @transform_11(%arg0: i32) -> (i32, i32) {
    %c0_i32 = arith.constant 0 : i32
    %c0_i32_0 = arith.constant 0 : i32
    %c0_i32_1 = arith.constant 0 : i32
    return %c0_i32, %c0_i32_0 : i32, i32
  }
}

</mosaic_0001>

<bundles_post_ra>
// kernel: rnn_rollout.1
= control target key start
LH: loop header
LB: loop body
LE: loop exit
PB: predicated region body
PF: predicated region fallthrough
CT: control target
= control target key end

     0   :  { %17 = vsyncpa [#allocation4], 0  ;;  %s1424_s0 = inlined_call_operand.vmem [shape: bf16[1,8,128], index: 0, kind: input, shape index: {}]   ;;  %s1425_s1 = inlined_call_operand.vmem [shape: f32[8,128], index: 1, kind: input, shape index: {}, may-alias: {1,11}]   ;;  %s1426_s2 = inlined_call_operand.vmem [shape: bf16[128,128], index: 2, kind: input, shape index: {}]   ;;  %s1427_s3 = inlined_call_operand.vmem [shape: f32[1,128], index: 3, kind: input, shape index: {}]   ;;  %s1428_s4 = inlined_call_operand.hbm [shape: bf16[128,384], index: 4, kind: input, shape index: {}]   ;;  %s1429_s5 = inlined_call_operand.hbm [shape: bf16[128,384], index: 5, kind: input, shape index: {}]   ;;  %s1430_s6 = inlined_call_operand.vmem [shape: f32[1,384], index: 6, kind: input, shape index: {}]   ;;  %s1431_s7 = inlined_call_operand.vmem [shape: f32[1,128], index: 7, kind: input, shape index: {}]   ;;  %s1432_s8 = inlined_call_operand.hbm [shape: bf16[128,128], index: 8, kind: input, shape index: {}]   ;;  %s1433_s9 = inlined_call_operand.vmem [shape: f32[1,128], index: 9, kind: input, shape index: {}]   ;;  %s1434_s10 = inlined_call_operand.vmem [shape: f32[1,8,128], index: 10, kind: output, shape index: {0}]   ;;  %s1435_s11 = inlined_call_operand.vmem [shape: f32[8,128], index: 11, kind: output, shape index: {1}, may-alias: {1,11}]  }
   0x1   :  { %18 = vsyncpa [#allocation6], 0  ;;  %s1218_s17 = smov [#allocation5]   ;;  %s1219_s19 = smov [#allocation3]  }
   0x2   :  { %s44_s18 = sshll.u32 %s1218_s17, 4  ;;  %s32_s20 = sshll.u32 %s1219_s19, 4  ;;  %s45_s18 = int_to_ptr.vmem [resolvable:$true] %s44_s18  ;;  %s1288_s20 = int_to_ptr.vmem [resolvable:$true] %s32_s20 }
   0x3   :  { %s1148_s23 = scalar_lea.hbm %s1429_s5, 3072 }
   0x4   :  { %p1149_p0 = scmp.ne.s32.totalorder %s1429_s5, %s1148_s23  ;;  %p1152_p1 = scmp.lt.u32.totalorder %s1148_s23, %s1429_s5 }
   0x6   :  { %p1154_p2 = pnand %p1152_p1, %p1149_p0 }
   0x8   :  { %1157 = shalt.err (!%p1154_p2)
}
   0x9   :  { %s1158_s28 = scalar_lea.vmem %s45_s18, 3072  ;;  %p1163_p4 = scmp.lt.s32.totalorder %s45_s18, %s45_s18 }
   0xa   :  { %p1159_p3 = scmp.ne.s32.totalorder %s45_s18, %s1158_s28  ;;  %p1164_p5 = scmp.lt.s32.totalorder %s1158_s28, %s1158_s28 }
   0xc   :  { %p1165_p6 = por %p1164_p5, %p1163_p4 }
   0xe   :  { %p1166_p7 = pnand %p1165_p6, %p1159_p3 }
  0x10   :  { %1169 = shalt.err (!%p1166_p7)
}
  0x11   :  { %s1220_s29 = smov 192   ;;  %s1221_s30 = smov 12  }
  0x12   :  { %50 = dma.hbm_to_vmem [thread:$0]  %s1429_s5, 3072, %s45_s18, [#allocation6], %s1220_s29, %s1220_s29, %s1221_s30  }
  0x13   :  { %s1170_s16 = scalar_lea.hbm %s1428_s4, 3072 }
  0x14   :  { %p1171_p8 = scmp.ne.s32.totalorder %s1428_s4, %s1170_s16  ;;  %p1174_p9 = scmp.lt.u32.totalorder %s1170_s16, %s1428_s4 }
  0x16   :  { %p1176_p10 = pnand %p1174_p9, %p1171_p8 }
  0x18   :  { %1179 = shalt.err (!%p1176_p10)
}
  0x19   :  { %s1180_s23 = scalar_lea.vmem %s1288_s20, 3072  ;;  %p1185_p12 = scmp.lt.s32.totalorder %s1288_s20, %s1288_s20 }
  0x1a   :  { %p1181_p11 = scmp.ne.s32.totalorder %s1288_s20, %s1180_s23  ;;  %p1186_p13 = scmp.lt.s32.totalorder %s1180_s23, %s1180_s23 }
  0x1c   :  { %p1187_p0 = por %p1186_p13, %p1185_p12 }
  0x1e   :  { %p1188_p1 = pnand %p1187_p0, %p1181_p11 }
  0x20   :  { %1191 = shalt.err (!%p1188_p1)
}
  0x21   :  { %38 = dma.hbm_to_vmem [thread:$0]  %s1428_s4, 3072, %s1288_s20, [#allocation4], %s1220_s29, %s1220_s29, %s1221_s30  }
  0x22   :  { %s1222_s24 = smov [#allocation7]   ;;  %s1192_s28 = scalar_lea.hbm %s1432_s8, 1024 }
  0x23   :  { %s60_s25 = sshll.u32 %s1222_s24, 4  ;;  %p1193_p2 = scmp.ne.s32.totalorder %s1432_s8, %s1192_s28  ;;  %s61_s25 = int_to_ptr.vmem [resolvable:$true] %s60_s25 }
  0x24   :  { %p1196_p3 = scmp.lt.u32.totalorder %s1192_s28, %s1432_s8 }
  0x26   :  { %p1198_p4 = pnand %p1196_p3, %p1193_p2 }
  0x28   :  { %1201 = shalt.err (!%p1198_p4)
}
  0x29   :  { %s1202_s16 = scalar_lea.vmem %s61_s25, 1024  ;;  %p1207_p6 = scmp.lt.s32.totalorder %s61_s25, %s61_s25 }
  0x2a   :  { %p1203_p5 = scmp.ne.s32.totalorder %s61_s25, %s1202_s16  ;;  %p1208_p7 = scmp.lt.s32.totalorder %s1202_s16, %s1202_s16 }
  0x2c   :  { %p1209_p8 = por %p1208_p7, %p1207_p6 }
  0x2e   :  { %p1210_p9 = pnand %p1209_p8, %p1203_p5 }
  0x30   :  { %1213 = shalt.err (!%p1210_p9)
}
  0x31   :  { %s1223_s4 = smov 64   ;;  %s1224_s20 = smov 4  }
  0x32   :  { %66 = dma.hbm_to_vmem [thread:$0]  %s1432_s8, 1024, %s61_s25, [#allocation6], %s1223_s4, %s1223_s4, %s1224_s20  }
  0x33   :  { %1214 = dma.done.wait [#allocation4], 3072  }
  0x34   :  { %1215 = vsyncadd [#allocation4], 4294964224 }
  0x35   :  { %1216 = dma.done.wait [#allocation6], 4096  }
  0x36   :  { %1217 = vsyncadd [#allocation6], 4294963200  ;;  %v1225_v0 = vmov 0.0   ;;  %vm1226_vm0 = vmmov 0   ;;  %v1058_v1 = vld [vmem:[%s1426_s2] sm:$0xff]   ;;  %v1059_v2 = vld [vmem:[%s1426_s2 + $0x8] sm:$0xff]  }
  0x37   :  { %962 = vmatprep.subr.bf16.mxu0 %v1225_v0  ;;  %978 = vmatprep.mubr.msk.bf16.mxu0 %vm1226_vm0, %v1225_v0  ;;  %v1060_v3 = vld [vmem:[%s1426_s2 + $0x10] sm:$0xff]   ;;  %v1068_v5 = vld [vmem:[#allocation3] ss:$12 sps:$4 sm:$0xff]   ;;  %v1061_v6 = vld [vmem:[%s1426_s2 + $0x18] sm:$0xff]   ;;  %v1227_v35 = vmov 0  }
  0x38   :  { %963 = vmatpush3.bf16.msra.mxu0 %v1058_v1  ;;  %v1066_v4 = vld [vmem:[#allocation3 + $0x4] ss:$12 sps:$4 sm:$0xff]   ;;  %v1070_v7 = vld [vmem:[#allocation3 + $0x1c] ss:$12 sps:$4 sm:$0xff]   ;;  %v1074_v9 = vld [vmem:[#allocation3 + $0x34] ss:$12 sps:$4 sm:$0xff]   ;;  %409 = vmatprep.mubr.bf16.mxu1 %v1227_v35 }
  0x39   :  { %964 = vmatprep.subr.bf16.mxu0 %v1225_v0  ;;  %377 = vmatprep.subr.bf16.mxu1 %v1066_v4  ;;  %v1072_v8 = vld [vmem:[#allocation3 + $0x18] ss:$12 sps:$4 sm:$0xff]   ;;  %v1076_v11 = vld [vmem:[#allocation3 + $0x30] ss:$12 sps:$4 sm:$0xff]   ;;  %v1063_v13 = vld [vmem:[%s1426_s2 + $0x28] sm:$0xff]  }
  0x3a   :  { %378 = vmatpush1.bf16.msra.mxu1 %v1068_v5  ;;  %v1062_v10 = vld [vmem:[%s1426_s2 + $0x20] sm:$0xff]   ;;  %v1078_v12 = vld [vmem:[#allocation3 + $0x4c] ss:$12 sps:$4 sm:$0xff]   ;;  %v1080_v14 = vld [vmem:[#allocation3 + $0x48] ss:$12 sps:$4 sm:$0xff]  }
  0x3b   :  { %379 = vmatprep.subr.bf16.mxu1 %v1070_v7  ;;  %v1082_v15 = vld [vmem:[#allocation3 + $0x64] ss:$12 sps:$4 sm:$0xff]   ;;  %v1084_v17 = vld [vmem:[#allocation3 + $0x60] ss:$12 sps:$4 sm:$0xff]   ;;  %v1086_v18 = vld [vmem:[#allocation3 + $0x7c] ss:$12 sps:$4 sm:$0xff]  }
  0x3c   :  { %965 = vmatpush3.bf16.msra.mxu0 %v1059_v2  ;;  %v1064_v16 = vld [vmem:[%s1426_s2 + $0x30] sm:$0xff]   ;;  %v1065_v19 = vld [vmem:[%s1426_s2 + $0x38] sm:$0xff]   ;;  %v86_v22 = vld [vmem:[%s1424_s0] sm:$0xf] }
  0x3d   :  { %966 = vmatprep.subr.bf16.mxu0 %v1225_v0  ;;  %v1088_v20 = vld [vmem:[#allocation3 + $0x78] ss:$12 sps:$4 sm:$0xff]   ;;  %v1090_v21 = vld [vmem:[#allocation3 + $0x94] ss:$12 sps:$4 sm:$0xff]   ;;  %v1092_v24 = vld [vmem:[#allocation3 + $0x90] ss:$12 sps:$4 sm:$0xff]  }
  0x3e   :  { %380 = vmatpush1.bf16.msra.mxu1 %v1072_v8  ;;  %v1069_v23 = vld [vmem:[#allocation3 + $0x8] ss:$12 sps:$4 sm:$0xff]   ;;  %v1073_v25 = vld [vmem:[#allocation3 + $0x20] ss:$12 sps:$4 sm:$0xff]   ;;  %v1077_v26 = vld [vmem:[#allocation3 + $0x38] ss:$12 sps:$4 sm:$0xff]  }
  0x3f   :  { %381 = vmatprep.subr.bf16.mxu1 %v1074_v9  ;;  %v1081_v27 = vld [vmem:[#allocation3 + $0x50] ss:$12 sps:$4 sm:$0xff]   ;;  %v1085_v28 = vld [vmem:[#allocation3 + $0x68] ss:$12 sps:$4 sm:$0xff]   ;;  %v1089_v29 = vld [vmem:[#allocation3 + $0x80] ss:$12 sps:$4 sm:$0xff]  }
  0x40   :  { %967 = vmatpush3.bf16.msra.mxu0 %v1060_v3  ;;  %v1093_v30 = vld [vmem:[#allocation3 + $0x98] ss:$12 sps:$4 sm:$0xff]   ;;  %v1096_v32 = vld [vmem:[#allocation3 + $0xa8] ss:$12 sps:$4 sm:$0xff]   ;;  %v1097_v33 = vld [vmem:[#allocation3 + $0xb0] ss:$12 sps:$4 sm:$0xff]  }
  0x41   :  { %968 = vmatprep.subr.bf16.mxu0 %v1225_v0  ;;  %v1094_v31 = vld [vmem:[#allocation3 + $0xac] ss:$12 sps:$4 sm:$0xff]   ;;  %v1100_v34 = vld [vmem:[#allocation5 + $0x4] ss:$12 sps:$4 sm:$0xff]   ;;  %v857_v36 = vld [vmem:[%s1427_s3] ss:$0 sm:$0xff] }
  0x42   :  { %382 = vmatpush1.bf16.msra.mxu1 %v1076_v11  ;;  %v1098_v43 = vld [vmem:[#allocation5] ss:$12 sps:$4 sm:$0xff]   ;;  %v1119_v44 = vld [vmem:[#allocation5 + $0x8] ss:$12 sps:$4 sm:$0xff]   ;;  %v1101_v47 = vld [vmem:[#allocation5 + $0x18] ss:$12 sps:$4 sm:$0xff]  }
  0x43   :  { %383 = vmatprep.subr.bf16.mxu1 %v1078_v12  ;;  %v1103_v46 = vld [vmem:[#allocation5 + $0x1c] ss:$12 sps:$4 sm:$0xff]   ;;  %v1123_v48 = vld [vmem:[#allocation5 + $0x20] ss:$12 sps:$4 sm:$0xff]   ;;  %v1124_v51 = vld [vmem:[#allocation5 + $0x38] ss:$12 sps:$4 sm:$0xff]  }
  0x44   :  { %969 = vmatpush3.bf16.msra.mxu0 %v1061_v6  ;;  %v1106_v49 = vld [vmem:[#allocation5 + $0x34] ss:$12 sps:$4 sm:$0xff]   ;;  %v1104_v50 = vld [vmem:[#allocation5 + $0x30] ss:$12 sps:$4 sm:$0xff]   ;;  %v1109_v52 = vld [vmem:[#allocation5 + $0x4c] ss:$12 sps:$4 sm:$0xff]  }
  0x45   :  { %970 = vmatprep.subr.bf16.mxu0 %v1225_v0  ;;  %v1107_v53 = vld [vmem:[#allocation5 + $0x48] ss:$12 sps:$4 sm:$0xff]   ;;  %v1125_v54 = vld [vmem:[#allocation5 + $0x50] ss:$12 sps:$4 sm:$0xff]   ;;  %v1110_v56 = vld [vmem:[#allocation5 + $0x60] ss:$12 sps:$4 sm:$0xff]  }
  0x46   :  { %384 = vmatpush1.bf16.msra.mxu1 %v1080_v14  ;;  %v1112_v55 = vld [vmem:[#allocation5 + $0x64] ss:$12 sps:$4 sm:$0xff]   ;;  %v1126_v57 = vld [vmem:[#allocation5 + $0x68] ss:$12 sps:$4 sm:$0xff]   ;;  %v1127_v60 = vld [vmem:[#allocation5 + $0x80] ss:$12 sps:$4 sm:$0xff]  }
  0x47   :  { %385 = vmatprep.subr.bf16.mxu1 %v1082_v15  ;;  %v1115_v58 = vld [vmem:[#allocation5 + $0x7c] ss:$12 sps:$4 sm:$0xff]   ;;  %v1113_v59 = vld [vmem:[#allocation5 + $0x78] ss:$12 sps:$4 sm:$0xff]   ;;  %v1118_v61 = vld [vmem:[#allocation5 + $0x94] ss:$12 sps:$4 sm:$0xff]  }
  0x48   :  { %971 = vmatpush3.bf16.msra.mxu0 %v1062_v10  ;;  %v1116_v62 = vld [vmem:[#allocation5 + $0x90] ss:$12 sps:$4 sm:$0xff]   ;;  %v1128_v63 = vld [vmem:[#allocation5 + $0x98] ss:$12 sps:$4 sm:$0xff]   ;;  %v1120_v2 = vld [vmem:[#allocation5 + $0xa8] ss:$12 sps:$4 sm:$0xff]  }
  0x49   :  { %972 = vmatprep.subr.bf16.mxu0 %v1225_v0  ;;  %v1122_v1 = vld [vmem:[#allocation5 + $0xac] ss:$12 sps:$4 sm:$0xff]   ;;  %v1393_v3 = vld [vmem:[%s1425_s1] sm:$0xff]  ;;  %v1129_v4 = vld [vmem:[#allocation5 + $0xb0] ss:$12 sps:$4 sm:$0xff]  }
  0x4a   :  { %386 = vmatpush1.bf16.msra.mxu1 %v1084_v17  ;;  %v458_v5 = vpack.c.bf16 %v1393_v3, %v1393_v3  ;;  %v1130_v6 = vld [vmem:[#allocation7] sm:$0xff]   ;;  %v1131_v7 = vld [vmem:[#allocation7 + $0x8] sm:$0xff]   ;;  %v1132_v8 = vld [vmem:[#allocation7 + $0x10] sm:$0xff]  }
  0x4b   :  { %387 = vmatprep.subr.bf16.mxu1 %v1086_v18  ;;  %v1133_v9 = vld [vmem:[#allocation7 + $0x18] sm:$0xff]   ;;  %v1134_v10 = vld [vmem:[#allocation7 + $0x20] sm:$0xff]   ;;  %v1135_v11 = vld [vmem:[#allocation7 + $0x28] sm:$0xff]   ;;  %v234_v18 = vlaneseq }
  0x4c   :  { %973 = vmatpush3.bf16.msra.mxu0 %v1063_v13  ;;  %v1136_v12 = vld [vmem:[#allocation7 + $0x30] sm:$0xff]   ;;  %v1137_v13 = vld [vmem:[#allocation7 + $0x38] sm:$0xff]  }
  0x4d   :  { %974 = vmatprep.subr.bf16.mxu0 %v1225_v0 }
  0x4e   :  { %388 = vmatpush1.bf16.msra.mxu1 %v1088_v20 }
  0x4f   :  { %389 = vmatprep.subr.bf16.mxu1 %v1090_v21  ;;  %v232_v21 = vld [vmem:[%s1430_s6] sm:$0x7] }
  0x50   :  { %975 = vmatpush3.bf16.msra.mxu0 %v1064_v16 }
  0x51   :  { %976 = vmatprep.subr.bf16.mxu0 %v1225_v0 }
  0x52   :  { %390 = vmatpush1.bf16.msra.mxu1 %v1092_v24 }
  0x53   :  { %391 = vmatprep.subr.bf16.mxu1 %v1094_v31 }
  0x54   :  { %977 = vmatpush3.bf16.msra.mxu0 %v1065_v19  ;;  %v235_v19 = vshrl.u32 %v234_v18, 7 }
  0x55   :  { %982 = vmatprep.subr.bf16.mxu0 %v1225_v0 }
  0x56   :  { %392 = vmatpush1.bf16.msra.mxu1 %v1096_v32  ;;  %v236_v20 = vsub.s32 0, %v235_v19 }
  0x57   :  { %979 = vmatmul.mubr.bf16.vlgmr.msra.gmra.mrb[0].mxu0 %v86_v22  ;;  %619 = vmatprep.subr.bf16.mxu1 %v1100_v34  ;;  %v240_v22 = vsub.s32 1, %v235_v19 }
  0x58   :  { %983 = vmatpush3.bf16.msra.mxu0 %v1069_v23  ;;  %998 = vmatprep.mubr.msk.bf16.mxu0 %vm1226_vm0, %v1225_v0  ;;  %v237_v23 = vrot.slane %v232_v21, %v236_v20 }
  0x59   :  { %984 = vmatprep.subr.bf16.mxu0 %v1225_v0 }
  0x5c   :  { %985 = vmatpush3.bf16.msra.mxu0 %v1073_v25  ;;  %v241_v25 = vrot.slane %v232_v21, %v240_v22 }
  0x5d   :  { %986 = vmatprep.subr.bf16.mxu0 %v1225_v0 }
  0x60   :  { %987 = vmatpush3.bf16.msra.mxu0 %v1077_v26 }
  0x61   :  { %988 = vmatprep.subr.bf16.mxu0 %v1225_v0 }
  0x64   :  { %989 = vmatpush3.bf16.msra.mxu0 %v1081_v27 }
  0x65   :  { %990 = vmatprep.subr.bf16.mxu0 %v1225_v0 }
  0x68   :  { %991 = vmatpush3.bf16.msra.mxu0 %v1085_v28 }
  0x69   :  { %992 = vmatprep.subr.bf16.mxu0 %v1225_v0 }
  0x6c   :  { %993 = vmatpush3.bf16.msra.mxu0 %v1089_v29 }
  0x6d   :  { %994 = vmatprep.subr.bf16.mxu0 %v1225_v0 }
  0x70   :  { %995 = vmatpush3.bf16.msra.mxu0 %v1093_v30 }
  0x71   :  { %996 = vmatprep.subr.bf16.mxu0 %v1225_v0 }
  0x74   :  { %997 = vmatpush3.bf16.msra.mxu0 %v1097_v33 }
  0x75   :  { %1002 = vmatprep.subr.bf16.mxu0 %v1225_v0 }
 0x12a   :  { %v192_v37 = vpop.f32.mrb[0].mxu0 }
 0x12b   :  { %v193_v38 = vadd.f32 %v857_v36, %v192_v37  ;;  %v980_v39 = vpop.f32.mrb[1].mxu0 }
 0x12c   :  { %v195_v40 = vpop.f32.mrb[2].mxu0 }
 0x12d   :  { %v198_v41 = vmax.f32 %v193_v38, 0.0  ;;  %v981_v42 = vpop.f32.mrb[3].mxu0  ;;  %v244_v38 = vsub.s32 2, %v235_v19  ;;  %v916_v40 = vld [vmem:[%s1431_s7] ss:$0 sm:$0xff] }
 0x12f   :  { %v199_v45 = vpack.c.bf16 %v198_v41, %v198_v41  ;;  %v245_v41 = vrot.slane %v232_v21, %v244_v38 }
 0x131   :  { %410 = vmatmul.mubr.bf16.vlgmr.msra.gmra.mrb[0].mxu1 %v199_v45  ;;  %999 = vmatmul.mubr.bf16.vlgmr.msra.gmra.mrb[4].mxu0 %v199_v45 }
 0x132   :  { %620 = vmatpush1.bf16.msra.mxu1 %v1098_v43  ;;  %1003 = vmatpush3.bf16.msra.mxu0 %v1119_v44 }
 0x133   :  { %621 = vmatprep.subr.bf16.mxu1 %v1103_v46  ;;  %1004 = vmatprep.subr.bf16.mxu0 %v1225_v0 }
 0x134   :  { %651 = vmatprep.mubr.bf16.mxu1 %v1227_v35  ;;  %1018 = vmatprep.mubr.msk.bf16.mxu0 %vm1226_vm0, %v1225_v0 }
 0x136   :  { %622 = vmatpush1.bf16.msra.mxu1 %v1101_v47  ;;  %1005 = vmatpush3.bf16.msra.mxu0 %v1123_v48 }
 0x137   :  { %623 = vmatprep.subr.bf16.mxu1 %v1106_v49  ;;  %1006 = vmatprep.subr.bf16.mxu0 %v1225_v0 }
 0x13a   :  { %624 = vmatpush1.bf16.msra.mxu1 %v1104_v50  ;;  %1007 = vmatpush3.bf16.msra.mxu0 %v1124_v51 }
 0x13b   :  { %625 = vmatprep.subr.bf16.mxu1 %v1109_v52  ;;  %1008 = vmatprep.subr.bf16.mxu0 %v1225_v0 }
 0x13e   :  { %626 = vmatpush1.bf16.msra.mxu1 %v1107_v53  ;;  %1009 = vmatpush3.bf16.msra.mxu0 %v1125_v54 }
 0x13f   :  { %627 = vmatprep.subr.bf16.mxu1 %v1112_v55  ;;  %1010 = vmatprep.subr.bf16.mxu0 %v1225_v0  ;;  %v917_v55 = vld [vmem:[%s1433_s9] ss:$0 sm:$0xff] }
 0x142   :  { %628 = vmatpush1.bf16.msra.mxu1 %v1110_v56  ;;  %1011 = vmatpush3.bf16.msra.mxu0 %v1126_v57 }
 0x143   :  { %629 = vmatprep.subr.bf16.mxu1 %v1115_v58  ;;  %1012 = vmatprep.subr.bf16.mxu0 %v1225_v0 }
 0x146   :  { %630 = vmatpush1.bf16.msra.mxu1 %v1113_v59  ;;  %1013 = vmatpush3.bf16.msra.mxu0 %v1127_v60 }
 0x147   :  { %631 = vmatprep.subr.bf16.mxu1 %v1118_v61  ;;  %1014 = vmatprep.subr.bf16.mxu0 %v1225_v0 }
 0x14a   :  { %632 = vmatpush1.bf16.msra.mxu1 %v1116_v62  ;;  %1015 = vmatpush3.bf16.msra.mxu0 %v1128_v63 }
 0x14b   :  { %633 = vmatprep.subr.bf16.mxu1 %v1122_v1  ;;  %1016 = vmatprep.subr.bf16.mxu0 %v1225_v0 }
 0x14e   :  { %634 = vmatpush1.bf16.msra.mxu1 %v1120_v2  ;;  %1017 = vmatpush3.bf16.msra.mxu0 %v1129_v4 }
 0x14f   :  { %1022 = vmatprep.subr.bf16.mxu1 %v1225_v0 }
 0x151   :  { %652 = vmatmul.mubr.bf16.vlgmr.msra.gmra.mrb[0].mxu1 %v458_v5  ;;  %1019 = vmatmul.mubr.bf16.vlgmr.msra.gmra.mrb[8].mxu0 %v458_v5 }
 0x152   :  { %1038 = vmatprep.mubr.msk.bf16.mxu1 %vm1226_vm0, %v1225_v0  ;;  %1023 = vmatpush3.bf16.msra.mxu1 %v1130_v6 }
 0x153   :  { %1024 = vmatprep.subr.bf16.mxu1 %v1225_v0 }
 0x156   :  { %1025 = vmatpush3.bf16.msra.mxu1 %v1131_v7 }
 0x157   :  { %1026 = vmatprep.subr.bf16.mxu1 %v1225_v0 }
 0x15a   :  { %1027 = vmatpush3.bf16.msra.mxu1 %v1132_v8 }
 0x15b   :  { %1028 = vmatprep.subr.bf16.mxu1 %v1225_v0 }
 0x15e   :  { %1029 = vmatpush3.bf16.msra.mxu1 %v1133_v9 }
 0x15f   :  { %1030 = vmatprep.subr.bf16.mxu1 %v1225_v0 }
 0x162   :  { %1031 = vmatpush3.bf16.msra.mxu1 %v1134_v10 }
 0x163   :  { %1032 = vmatprep.subr.bf16.mxu1 %v1225_v0 }
 0x166   :  { %1033 = vmatpush3.bf16.msra.mxu1 %v1135_v11 }
 0x167   :  { %1034 = vmatprep.subr.bf16.mxu1 %v1225_v0 }
 0x16a   :  { %1035 = vmatpush3.bf16.msra.mxu1 %v1136_v12 }
 0x16b   :  { %1036 = vmatprep.subr.bf16.mxu1 %v1225_v0 }
 0x16e   :  { %1037 = vmatpush3.bf16.msra.mxu1 %v1137_v13 }
 0x204   :  { %v452_v14 = vpop.f32.mrb[4].mxu0 }
 0x205   :  { %v1000_v15 = vpop.f32.mrb[5].mxu0  ;;  %v453_v45 = vadd.f32 %v452_v14, %v245_v41 }
 0x206   :  { %v455_v16 = vpop.f32.mrb[6].mxu0 }
 0x207   :  { %v1001_v17 = vpop.f32.mrb[7].mxu0 }
 0x224   :  { %v653_v24 = vpop.f32.mrb[0].mxu1  ;;  %v694_v26 = vpop.f32.mrb[8].mxu0 }
 0x225   :  { %v1042_v27 = vadd.f32 %v653_v24, %v237_v23  ;;  %v655_v28 = vpop.f32.mrb[1].mxu1  ;;  %v1020_v0 = vpop.f32.mrb[9].mxu0  ;;  %v721_v43 = vadd.f32 %v916_v40, %v694_v26 }
 0x226   :  { %v657_v29 = vpop.f32.mrb[2].mxu1  ;;  %v697_v30 = vpop.f32.mrb[10].mxu0  ;;  %v1043_v34 = vadd.f32 %v655_v28, %v241_v25 }
 0x227   :  { %v914_v31 = vmul.f32 -1.442695, %v1042_v27  ;;  %v658_v32 = vpop.f32.mrb[3].mxu1  ;;  %v1021_v33 = vpop.f32.mrb[11].mxu0 }
 0x228   :  { %v915_v35 = vmul.f32 -1.442695, %v1043_v34 }
 0x229   :  { %1138 = vpow2.f32 %v914_v31 }
 0x22a   :  { %1140 = vpow2.f32 %v915_v35 }
 0x233   :  { %v1139_v36 = vpop.eup %1138 }
 0x234   :  { %v704_v37 = vadd.f32 1.0, %v1139_v36  ;;  %v1141_v39 = vpop.eup %1140 }
 0x235   :  { %v711_v42 = vadd.f32 1.0, %v1141_v39 }
 0x236   :  { %1142 = vrcp.f32 %v704_v37 }
 0x237   :  { %1144 = vrcp.f32 %v711_v42 }
 0x240   :  { %v1143_v44 = vpop.eup %1142 }
 0x241   :  { %v722_v46 = vmul.f32 %v1143_v44, %v721_v43  ;;  %v1145_v48 = vpop.eup %1144 }
 0x242   :  { %v725_v49 = vsub.f32 1.0, %v1145_v48  ;;  %v727_v52 = vmul.f32 %v1145_v48, %v1393_v3 }
 0x243   :  { %v723_v47 = vadd.f32 %v722_v46, %v453_v45 }
 0x245   :  { %1146 = vtanh.f32 %v723_v47 }
 0x24f   :  { %v1147_v50 = vpop.eup %1146 }
 0x250   :  { %v726_v51 = vmul.f32 %v1147_v50, %v725_v49 }
 0x252   :  { %v728_v53 = vadd.f32 %v727_v52, %v726_v51 }
 0x254   :  { %v729_v54 = vpack.c.bf16 %v728_v53, %v728_v53  ;;  %846 = vst [vmem:[%s1435_s11] sm:$0xff] %v728_v53 }
 0x256   :  { %1039 = vmatmul.mubr.bf16.vlgmr.msra.gmra.mrb[4].mxu1 %v729_v54 }
 0x329   :  { %v835_v56 = vpop.f32.mrb[4].mxu1 }
 0x32a   :  { %v836_v57 = vadd.f32 %v917_v55, %v835_v56  ;;  %v1040_v58 = vpop.f32.mrb[5].mxu1 }
 0x32b   :  { %v838_v59 = vpop.f32.mrb[6].mxu1 }
 0x32c   :  { %841 = vst [vmem:[%s1434_s10] sm:$0xff] %v836_v57  ;;  %v1041_v60 = vpop.f32.mrb[7].mxu1 }
 0x32d   :  { %855 = vsyncpa [#allocation4], 1 }
 0x32e   :  { %856 = vsyncpa [#allocation6], 1 }

</bundles_post_ra>
